<compile_context>
chip_gen: v7x
topology: tpu7x:2x2x1
jax: 0.10.0
libtpu: 0.0.40
codegen_flags: <defaults>
</compile_context>

<pallas_src>
import math
import functools

import jax
import jax.numpy as jnp
from jax import lax
from jax.experimental import pallas as pl

NUM_HEADS = 8


# --------------------------- small static-int helpers ------------------------

def _div_const(x, d):
    """x // d for non-negative int32 vectors; shift when d is a power of two."""
    if d & (d - 1) == 0:
        return lax.shift_right_logical(x, d.bit_length() - 1)
    return x // d


def _mod_const(x, d):
    """x % d for non-negative int32 vectors; bitwise-and when d is a power of two."""
    if d & (d - 1) == 0:
        return jnp.bitwise_and(x, d - 1)
    return x % d


# ------------------------------ fused kernel --------------------------------

def _fused_metadata_kernel(idx_ref, cont_ref, w_ref, o_ref, *,
                           layout, T, N, C, E, H, hd, d_meta):
    f32 = jnp.float32

    def wslice(name):
        row, r, c = layout[name]          # static python ints -> zero-cost view
        return w_ref[row:row + r, :c]

    # ---- embedding lookup fused with cat Linear1 (emb' = emb @ cat_w1) -------
    idx = idx_ref[...]                                                  # (T,1) i32
    onehot = jnp.where(
        lax.broadcasted_iota(jnp.int32, (T, C), 1) == idx, 1.0, 0.0).astype(f32)
    h_cat = jnp.maximum(
        jnp.dot(onehot, wslice("emb1"), preferred_element_type=f32)
        + wslice("cat_b1"), 0.0)                                        # (T, d_cat)
    h_cont = jnp.maximum(
        jnp.dot(cont_ref[...], wslice("cont_w1"), preferred_element_type=f32)
        + wslice("cont_b1"), 0.0)                                       # (T, d_cont)

    # ---- Q/K/V directly (cat_w2/cont_w2 + in_proj folded; Q-scale folded) ----
    def proj(wc, wu, b):
        return (jnp.dot(h_cat, wslice(wc), preferred_element_type=f32)
                + jnp.dot(h_cont, wslice(wu), preferred_element_type=f32)
                + wslice(b))                                            # (T, E)
    q = proj("wq_cat", "wq_cont", "bq")
    k = proj("wk_cat", "wk_cont", "bk")
    v = proj("wv_cat", "wv_cont", "bv")

    # ---- all heads in 3 MXU pushes via block-diagonal stacking ---------------
    HT = H * T
    r_i = lax.broadcasted_iota(jnp.int32, (HT, E), 0)
    e_i = lax.broadcasted_iota(jnp.int32, (HT, E), 1)
    # blockmask[h*T + j, e] = 1  iff  column e belongs to head h (e // hd == h)
    blockmask = jnp.where(_div_const(r_i, T) == _div_const(e_i, hd),
                          1.0, 0.0).astype(f32)                         # (HT, E)
    k_stack = jnp.concatenate([k] * H, axis=0) * blockmask              # (HT, E)
    v_stack = jnp.concatenate([v] * H, axis=0) * blockmask              # (HT, E)

    # S[i, h*T + j] = q_h[i] . k_h[j]   (scale already folded into q)
    s = lax.dot_general(q, k_stack, (((1,), (1,)), ((), ())),
                        preferred_element_type=f32)                     # (T, HT)

    # additive same-batch mask built in-kernel (rows are sequence-major,
    # batch id = token % N;  (c % T) % N == c % N since T is a multiple of N)
    qi = lax.broadcasted_iota(jnp.int32, (T, HT), 0)
    ki = lax.broadcasted_iota(jnp.int32, (T, HT), 1)
    s = s + jnp.where(_mod_const(qi, N) == _mod_const(ki, N),
                      0.0, -1e30).astype(f32)

    # softmax: per-row global max is a valid (constant-per-row) shift for every
    # head group; scores are O(1) so no group underflows.
    p = jnp.exp(s - jnp.max(s, axis=-1, keepdims=True))                 # (T, HT)
    unnorm = jnp.dot(p, v_stack, preferred_element_type=f32)            # (T, E)
    denom = jnp.dot(p, blockmask, preferred_element_type=f32)           # (T, E), per-head sums broadcast
    attn = unnorm * pl.reciprocal(denom, approx=True)

    # ---- fused out_proj + fc -------------------------------------------------
    o_ref[...] = (jnp.dot(attn, wslice("w_of"), preferred_element_type=f32)
                  + wslice("b_of"))


# --------------------- init-time folding & single-buffer packing -------------

def fold_and_pack(params, *, d_cat, d_cont, d_meta):
    """Fold the linear chain and pack every weight/bias into one (R, 64) f32
    buffer (each tensor row-aligned to 8, lane-0 aligned).  Done ONCE at init."""
    E = d_cat + d_cont
    H = NUM_HEADS
    hd = E // H
    scale = 1.0 / math.sqrt(hd)

    with jax.default_matmul_precision("highest"):
        emb1 = params["emb"] @ params["cat_w1"]                       # (C, d_cat)
        wqkv = params["w_qkv"]                                        # (E, 3E)
        wc = params["cat_w2"] @ wqkv[:d_cat]                          # (d_cat, 3E)
        wu = params["cont_w2"] @ wqkv[d_cat:]                         # (d_cont, 3E)
        b3 = (params["cat_b2"] @ wqkv[:d_cat]
              + params["cont_b2"] @ wqkv[d_cat:]
              + params["b_qkv"])                                      # (1, 3E)
        w_of = params["w_out"] @ params["w_fc"]                       # (E, d_meta)
        b_of = params["b_out"] @ params["w_fc"] + params["b_fc"]      # (1, d_meta)

    tensors = [
        ("emb1", emb1),
        ("cat_b1", params["cat_b1"]),
        ("cont_w1", params["cont_w1"]),
        ("cont_b1", params["cont_b1"]),
        ("wq_cat", wc[:, :E] * scale),
        ("wk_cat", wc[:, E:2 * E]),
        ("wv_cat", wc[:, 2 * E:]),
        ("wq_cont", wu[:, :E] * scale),
        ("wk_cont", wu[:, E:2 * E]),
        ("wv_cont", wu[:, 2 * E:]),
        ("bq", b3[:, :E] * scale),
        ("bk", b3[:, E:2 * E]),
        ("bv", b3[:, 2 * E:]),
        ("w_of", w_of),
        ("b_of", b_of),
    ]

    width = max(int(t.shape[1]) for _, t in tensors)
    layout = {}
    blocks = []
    row = 0
    for name, t in tensors:
        t = jnp.asarray(t, jnp.float32)
        r, c = int(t.shape[0]), int(t.shape[1])
        rp = ((r + 7) // 8) * 8                       # sublane-align each tensor
        blk = jnp.zeros((rp, width), jnp.float32).at[:r, :c].set(t)
        blocks.append(blk)
        layout[name] = (row, r, c)
        row += rp
    packed = jnp.concatenate(blocks, axis=0)          # (R, width) — one DMA
    return packed, layout


# ------------------------------ call wrapper ---------------------------------

def make_forward(layout, *, num_categories, num_continuous, d_cat, d_cont, d_meta):
    E = d_cat + d_cont
    H = NUM_HEADS
    assert E % H == 0
    hd = E // H

    def fwd(packed, c_cat, c_cont):
        L, N = c_cat.shape
        T = L * N
        idx = c_cat.reshape(T, 1).astype(jnp.int32)
        cont = c_cont.reshape(T, num_continuous).astype(jnp.float32)

        kernel = functools.partial(
            _fused_metadata_kernel, layout=layout,
            T=T, N=N, C=num_categories, E=E, H=H, hd=hd, d_meta=d_meta)

        out = pl.pallas_call(
            kernel,
            out_shape=jax.ShapeDtypeStruct((T, d_meta), jnp.float32),
        )(idx, cont, packed)
        return out.reshape(L, N, d_meta)

    return fwd


# ------------------------- deterministic parameters --------------------------

def init_params(key, num_categories, num_continuous, d_cat, d_cont, d_meta):
    # TODO(synk): the PyTorch forward re-creates self_attention/fc with fresh
    # random weights on every call; here they are created once at init.
    E = d_cat + d_cont
    keys = jax.random.split(key, 8)

    def lin(k, fan_in, fan_out):
        bound = 1.0 / math.sqrt(fan_in)
        kw, kb = jax.random.split(k)
        w = jax.random.uniform(kw, (fan_in, fan_out), jnp.float32, -bound, bound)
        b = jax.random.uniform(kb, (1, fan_out), jnp.float32, -bound, bound)
        return w, b

    p = {}
    p["emb"] = jax.random.normal(keys[0], (num_categories, num_categories), jnp.float32)
    p["cat_w1"], p["cat_b1"] = lin(keys[1], num_categories, d_cat)
    p["cat_w2"], p["cat_b2"] = lin(keys[2], d_cat, d_cat)
    p["cont_w1"], p["cont_b1"] = lin(keys[3], num_continuous, d_cont)
    p["cont_w2"], p["cont_b2"] = lin(keys[4], d_cont, d_cont)
    p["w_qkv"], p["b_qkv"] = lin(keys[5], E, 3 * E)     # in_proj stored (E, 3E)
    p["w_out"], p["b_out"] = lin(keys[6], E, E)
    p["w_fc"], p["b_fc"] = lin(keys[7], E, d_meta)
    return p


# --------------------------- pure-JAX reference ------------------------------

def reference_forward(params, c_cat, c_cont, *, d_cat, d_cont, d_meta):
    L, N = c_cat.shape
    E = d_cat + d_cont
    H = NUM_HEADS
    hd = E // H
    emb = params["emb"][c_cat]                                        # (L, N, C)
    h = jnp.maximum(emb @ params["cat_w1"] + params["cat_b1"][0], 0.0)
    z_cat = h @ params["cat_w2"] + params["cat_b2"][0]
    h = jnp.maximum(c_cont @ params["cont_w1"] + params["cont_b1"][0], 0.0)
    z_cont = h @ params["cont_w2"] + params["cont_b2"][0]
    z = jnp.concatenate([z_cat, z_cont], axis=-1)                     # (L, N, E)
    qkv = z @ params["w_qkv"] + params["b_qkv"][0]
    q, k, v = qkv[..., :E], qkv[..., E:2 * E], qkv[..., 2 * E:]

    def heads(x):
        return x.reshape(L, N, H, hd).transpose(1, 2, 0, 3)           # (N, H, L, hd)

    qh, kh, vh = heads(q), heads(k), heads(v)
    s = jnp.einsum("nhld,nhmd->nhlm", qh, kh) / math.sqrt(hd)
    p = jax.nn.softmax(s, axis=-1)
    o = jnp.einsum("nhlm,nhmd->nhld", p, vh)
    o = o.transpose(2, 0, 1, 3).reshape(L, N, E)
    o = o @ params["w_out"] + params["b_out"][0]
    return o @ params["w_fc"] + params["b_fc"][0]


# ----------------------------------- main ------------------------------------

if __name__ == "__main__":
    num_categories, num_continuous = 16, 8
    d_cat, d_cont, d_meta = 32, 32, 32       # embed dim E = 64, 8 heads, head_dim = 8
    L, N = 8, 2                              # seq len, batch

    key = jax.random.PRNGKey(0)
    kp, kc, kx = jax.random.split(key, 3)
    params = init_params(kp, num_categories, num_continuous, d_cat, d_cont, d_meta)
    packed, layout = fold_and_pack(params, d_cat=d_cat, d_cont=d_cont, d_meta=d_meta)

    c_cat = jax.random.randint(kc, (L, N), 0, num_categories, dtype=jnp.int32)
    c_cont = jax.random.normal(kx, (L, N, num_continuous), dtype=jnp.float32)

    fwd = jax.jit(make_forward(layout,
                               num_categories=num_categories,
                               num_continuous=num_continuous,
                               d_cat=d_cat, d_cont=d_cont, d_meta=d_meta))
    out = jax.block_until_ready(fwd(packed, c_cat, c_cont))
    assert out.shape == (L, N, d_meta)

    with jax.default_matmul_precision("highest"):
        ref = reference_forward(params, c_cat, c_cont,
                                d_cat=d_cat, d_cont=d_cont, d_meta=d_meta)
    assert jnp.allclose(out, ref, atol=1e-2, rtol=1e-2), "mismatch vs pure-JAX reference"

    print("KERNEL_OK")
</pallas_src>

<mosaic_0001>
module attributes {stable_mosaic.version = 11 : i64} {
  func.func @_fused_metadata_kernel(%arg0: memref<16x1xi32, #tpu.memory_space<vmem>>, %arg1: memref<16x8xf32, #tpu.memory_space<vmem>>, %arg2: memref<328x64xf32, #tpu.memory_space<vmem>>, %arg3: memref<16x32xf32, #tpu.memory_space<vmem>>) attributes {dimension_semantics = [], scalar_prefetch = 0 : i64, scratch_operands = 0 : i64, tpu.core_type = #tpu.core_type<tc>} {
    %c0 = arith.constant 0 : index
    %c0_0 = arith.constant 0 : index
    %0 = vector.load %arg0[%c0, %c0_0] : memref<16x1xi32, #tpu.memory_space<vmem>>, vector<16x1xi32>
    %1 = tpu.iota {dimensions = array<i32: 1>} : vector<16x16xi32>
    %2 = vector.broadcast %0 : vector<16x1xi32> to vector<16x16xi32>
    %3 = arith.cmpi eq, %1, %2 : vector<16x16xi32>
    %cst = arith.constant 1.000000e+00 : f32
    %cst_1 = arith.constant 0.000000e+00 : f32
    %4 = vector.broadcast %cst : f32 to vector<16x16xf32>
    %5 = vector.broadcast %cst_1 : f32 to vector<16x16xf32>
    %6 = arith.select %3, %4, %5 : vector<16x16xi1>, vector<16x16xf32>
    %c0_2 = arith.constant 0 : index
    %c0_3 = arith.constant 0 : index
    %7 = vector.load %arg2[%c0_2, %c0_3] : memref<328x64xf32, #tpu.memory_space<vmem>>, vector<16x32xf32>
    %cst_4 = arith.constant dense<0.000000e+00> : vector<16x32xf32>
    %8 = tpu.matmul %6, %7, %cst_4 {dimension_numbers = #tpu.dot_dimension_numbers<[1], [0], [0], [1], [0, 0, 1, 1], [], []>} : vector<16x16xf32>, vector<16x32xf32>, vector<16x32xf32> -> vector<16x32xf32>
    %c16 = arith.constant 16 : index
    %c0_5 = arith.constant 0 : index
    %9 = vector.load %arg2[%c16, %c0_5] : memref<328x64xf32, #tpu.memory_space<vmem>>, vector<1x32xf32>
    %10 = vector.broadcast %9 : vector<1x32xf32> to vector<16x32xf32>
    %11 = arith.addf %8, %10 : vector<16x32xf32>
    %cst_6 = arith.constant 0.000000e+00 : f32
    %12 = vector.broadcast %cst_6 : f32 to vector<16x32xf32>
    %13 = arith.maximumf %11, %12 : vector<16x32xf32>
    %c0_7 = arith.constant 0 : index
    %c0_8 = arith.constant 0 : index
    %14 = vector.load %arg1[%c0_7, %c0_8] : memref<16x8xf32, #tpu.memory_space<vmem>>, vector<16x8xf32>
    %c24 = arith.constant 24 : index
    %c0_9 = arith.constant 0 : index
    %15 = vector.load %arg2[%c24, %c0_9] : memref<328x64xf32, #tpu.memory_space<vmem>>, vector<8x32xf32>
    %cst_10 = arith.constant dense<0.000000e+00> : vector<16x32xf32>
    %16 = tpu.matmul %14, %15, %cst_10 {dimension_numbers = #tpu.dot_dimension_numbers<[1], [0], [0], [1], [0, 0, 1, 1], [], []>} : vector<16x8xf32>, vector<8x32xf32>, vector<16x32xf32> -> vector<16x32xf32>
    %c32 = arith.constant 32 : index
    %c0_11 = arith.constant 0 : index
    %17 = vector.load %arg2[%c32, %c0_11] : memref<328x64xf32, #tpu.memory_space<vmem>>, vector<1x32xf32>
    %18 = vector.broadcast %17 : vector<1x32xf32> to vector<16x32xf32>
    %19 = arith.addf %16, %18 : vector<16x32xf32>
    %cst_12 = arith.constant 0.000000e+00 : f32
    %20 = vector.broadcast %cst_12 : f32 to vector<16x32xf32>
    %21 = arith.maximumf %19, %20 : vector<16x32xf32>
    %c40 = arith.constant 40 : index
    %c0_13 = arith.constant 0 : index
    %22 = vector.load %arg2[%c40, %c0_13] : memref<328x64xf32, #tpu.memory_space<vmem>>, vector<32x64xf32>
    %cst_14 = arith.constant dense<0.000000e+00> : vector<16x64xf32>
    %23 = tpu.matmul %13, %22, %cst_14 {dimension_numbers = #tpu.dot_dimension_numbers<[1], [0], [0], [1], [0, 0, 1, 1], [], []>} : vector<16x32xf32>, vector<32x64xf32>, vector<16x64xf32> -> vector<16x64xf32>
    %c136 = arith.constant 136 : index
    %c0_15 = arith.constant 0 : index
    %24 = vector.load %arg2[%c136, %c0_15] : memref<328x64xf32, #tpu.memory_space<vmem>>, vector<32x64xf32>
    %cst_16 = arith.constant dense<0.000000e+00> : vector<16x64xf32>
    %25 = tpu.matmul %21, %24, %cst_16 {dimension_numbers = #tpu.dot_dimension_numbers<[1], [0], [0], [1], [0, 0, 1, 1], [], []>} : vector<16x32xf32>, vector<32x64xf32>, vector<16x64xf32> -> vector<16x64xf32>
    %26 = arith.addf %23, %25 : vector<16x64xf32>
    %c232 = arith.constant 232 : index
    %c0_17 = arith.constant 0 : index
    %27 = vector.load %arg2[%c232, %c0_17] : memref<328x64xf32, #tpu.memory_space<vmem>>, vector<1x64xf32>
    %28 = vector.broadcast %27 : vector<1x64xf32> to vector<16x64xf32>
    %29 = arith.addf %26, %28 : vector<16x64xf32>
    %c72 = arith.constant 72 : index
    %c0_18 = arith.constant 0 : index
    %30 = vector.load %arg2[%c72, %c0_18] : memref<328x64xf32, #tpu.memory_space<vmem>>, vector<32x64xf32>
    %cst_19 = arith.constant dense<0.000000e+00> : vector<16x64xf32>
    %31 = tpu.matmul %13, %30, %cst_19 {dimension_numbers = #tpu.dot_dimension_numbers<[1], [0], [0], [1], [0, 0, 1, 1], [], []>} : vector<16x32xf32>, vector<32x64xf32>, vector<16x64xf32> -> vector<16x64xf32>
    %c168 = arith.constant 168 : index
    %c0_20 = arith.constant 0 : index
    %32 = vector.load %arg2[%c168, %c0_20] : memref<328x64xf32, #tpu.memory_space<vmem>>, vector<32x64xf32>
    %cst_21 = arith.constant dense<0.000000e+00> : vector<16x64xf32>
    %33 = tpu.matmul %21, %32, %cst_21 {dimension_numbers = #tpu.dot_dimension_numbers<[1], [0], [0], [1], [0, 0, 1, 1], [], []>} : vector<16x32xf32>, vector<32x64xf32>, vector<16x64xf32> -> vector<16x64xf32>
    %34 = arith.addf %31, %33 : vector<16x64xf32>
    %c240 = arith.constant 240 : index
    %c0_22 = arith.constant 0 : index
    %35 = vector.load %arg2[%c240, %c0_22] : memref<328x64xf32, #tpu.memory_space<vmem>>, vector<1x64xf32>
    %36 = vector.broadcast %35 : vector<1x64xf32> to vector<16x64xf32>
    %37 = arith.addf %34, %36 : vector<16x64xf32>
    %c104 = arith.constant 104 : index
    %c0_23 = arith.constant 0 : index
    %38 = vector.load %arg2[%c104, %c0_23] : memref<328x64xf32, #tpu.memory_space<vmem>>, vector<32x64xf32>
    %cst_24 = arith.constant dense<0.000000e+00> : vector<16x64xf32>
    %39 = tpu.matmul %13, %38, %cst_24 {dimension_numbers = #tpu.dot_dimension_numbers<[1], [0], [0], [1], [0, 0, 1, 1], [], []>} : vector<16x32xf32>, vector<32x64xf32>, vector<16x64xf32> -> vector<16x64xf32>
    %c200 = arith.constant 200 : index
    %c0_25 = arith.constant 0 : index
    %40 = vector.load %arg2[%c200, %c0_25] : memref<328x64xf32, #tpu.memory_space<vmem>>, vector<32x64xf32>
    %cst_26 = arith.constant dense<0.000000e+00> : vector<16x64xf32>
    %41 = tpu.matmul %21, %40, %cst_26 {dimension_numbers = #tpu.dot_dimension_numbers<[1], [0], [0], [1], [0, 0, 1, 1], [], []>} : vector<16x32xf32>, vector<32x64xf32>, vector<16x64xf32> -> vector<16x64xf32>
    %42 = arith.addf %39, %41 : vector<16x64xf32>
    %c248 = arith.constant 248 : index
    %c0_27 = arith.constant 0 : index
    %43 = vector.load %arg2[%c248, %c0_27] : memref<328x64xf32, #tpu.memory_space<vmem>>, vector<1x64xf32>
    %44 = vector.broadcast %43 : vector<1x64xf32> to vector<16x64xf32>
    %45 = arith.addf %42, %44 : vector<16x64xf32>
    %46 = tpu.iota {dimensions = array<i32: 0>} : vector<128x64xi32>
    %47 = tpu.iota {dimensions = array<i32: 1>} : vector<128x64xi32>
    %c4_i32 = arith.constant 4 : i32
    %48 = vector.broadcast %c4_i32 : i32 to vector<128x64xi32>
    %49 = arith.shrui %46, %48 : vector<128x64xi32>
    %c3_i32 = arith.constant 3 : i32
    %50 = vector.broadcast %c3_i32 : i32 to vector<128x64xi32>
    %51 = arith.shrui %47, %50 : vector<128x64xi32>
    %52 = arith.cmpi eq, %49, %51 : vector<128x64xi32>
    %cst_28 = arith.constant 1.000000e+00 : f32
    %cst_29 = arith.constant 0.000000e+00 : f32
    %53 = vector.broadcast %cst_28 : f32 to vector<128x64xf32>
    %54 = vector.broadcast %cst_29 : f32 to vector<128x64xf32>
    %55 = arith.select %52, %53, %54 : vector<128x64xi1>, vector<128x64xf32>
    %56 = tpu.concatenate %37, %37, %37, %37, %37, %37, %37, %37 in 0 : vector<16x64xf32>, vector<16x64xf32>, vector<16x64xf32>, vector<16x64xf32>, vector<16x64xf32>, vector<16x64xf32>, vector<16x64xf32>, vector<16x64xf32> -> vector<128x64xf32>
    %57 = arith.mulf %56, %55 : vector<128x64xf32>
    %58 = tpu.concatenate %45, %45, %45, %45, %45, %45, %45, %45 in 0 : vector<16x64xf32>, vector<16x64xf32>, vector<16x64xf32>, vector<16x64xf32>, vector<16x64xf32>, vector<16x64xf32>, vector<16x64xf32>, vector<16x64xf32> -> vector<128x64xf32>
    %59 = arith.mulf %58, %55 : vector<128x64xf32>
    %cst_30 = arith.constant dense<0.000000e+00> : vector<16x128xf32>
    %60 = tpu.matmul %29, %57, %cst_30 {dimension_numbers = #tpu.dot_dimension_numbers<[1], [1], [0], [0], [0, 0, 1, 0], [], []>} : vector<16x64xf32>, vector<128x64xf32>, vector<16x128xf32> -> vector<16x128xf32>
    %61 = tpu.iota {dimensions = array<i32: 0>} : vector<16x128xi32>
    %62 = tpu.iota {dimensions = array<i32: 1>} : vector<16x128xi32>
    %c1_i32 = arith.constant 1 : i32
    %63 = vector.broadcast %c1_i32 : i32 to vector<16x128xi32>
    %64 = arith.andi %61, %63 : vector<16x128xi32>
    %c1_i32_31 = arith.constant 1 : i32
    %65 = vector.broadcast %c1_i32_31 : i32 to vector<16x128xi32>
    %66 = arith.andi %62, %65 : vector<16x128xi32>
    %67 = arith.cmpi eq, %64, %66 : vector<16x128xi32>
    %cst_32 = arith.constant 0.000000e+00 : f32
    %cst_33 = arith.constant -1.000000e+30 : f32
    %68 = vector.broadcast %cst_32 : f32 to vector<16x128xf32>
    %69 = vector.broadcast %cst_33 : f32 to vector<16x128xf32>
    %70 = arith.select %67, %68, %69 : vector<16x128xi1>, vector<16x128xf32>
    %71 = arith.addf %60, %70 : vector<16x128xf32>
    %cst_34 = arith.constant dense<0xFF800000> : vector<16xf32>
    %72 = vector.multi_reduction <maximumf>, %71, %cst_34 [1] : vector<16x128xf32> to vector<16xf32>
    %73 = vector.shape_cast %72 : vector<16xf32> to vector<16x1xf32>
    %74 = vector.broadcast %73 : vector<16x1xf32> to vector<16x128xf32>
    %75 = arith.subf %71, %74 : vector<16x128xf32>
    %76 = math.exp %75 : vector<16x128xf32>
    %cst_35 = arith.constant dense<0.000000e+00> : vector<16x64xf32>
    %77 = tpu.matmul %76, %59, %cst_35 {dimension_numbers = #tpu.dot_dimension_numbers<[1], [0], [0], [1], [0, 0, 1, 1], [], []>} : vector<16x128xf32>, vector<128x64xf32>, vector<16x64xf32> -> vector<16x64xf32>
    %cst_36 = arith.constant dense<0.000000e+00> : vector<16x64xf32>
    %78 = tpu.matmul %76, %55, %cst_36 {dimension_numbers = #tpu.dot_dimension_numbers<[1], [0], [0], [1], [0, 0, 1, 1], [], []>} : vector<16x128xf32>, vector<128x64xf32>, vector<16x64xf32> -> vector<16x64xf32>
    %79 = tpu.reciprocal %78 {approx = true} : vector<16x64xf32> -> vector<16x64xf32>
    %80 = arith.mulf %77, %79 : vector<16x64xf32>
    %c256 = arith.constant 256 : index
    %c0_37 = arith.constant 0 : index
    %81 = vector.load %arg2[%c256, %c0_37] : memref<328x64xf32, #tpu.memory_space<vmem>>, vector<64x32xf32>
    %cst_38 = arith.constant dense<0.000000e+00> : vector<16x32xf32>
    %82 = tpu.matmul %80, %81, %cst_38 {dimension_numbers = #tpu.dot_dimension_numbers<[1], [0], [0], [1], [0, 0, 1, 1], [], []>} : vector<16x64xf32>, vector<64x32xf32>, vector<16x32xf32> -> vector<16x32xf32>
    %c320 = arith.constant 320 : index
    %c0_39 = arith.constant 0 : index
    %83 = vector.load %arg2[%c320, %c0_39] : memref<328x64xf32, #tpu.memory_space<vmem>>, vector<1x32xf32>
    %84 = vector.broadcast %83 : vector<1x32xf32> to vector<16x32xf32>
    %85 = arith.addf %82, %84 : vector<16x32xf32>
    %c0_40 = arith.constant 0 : index
    %c0_41 = arith.constant 0 : index
    %86 = vector.load %arg3[%c0_40, %c0_41] : memref<16x32xf32, #tpu.memory_space<vmem>>, vector<16x32xf32>
    tpu.vector_store %arg3[%c0_40, %c0_41], %85 {strides = array<i32>} : memref<16x32xf32, #tpu.memory_space<vmem>>, vector<16x32xf32>,
    return
  }
}

</mosaic_0001>

<bundles_post_ra>
// kernel: fwd.1
= control target key start
LH: loop header
LB: loop body
LE: loop exit
PB: predicated region body
PF: predicated region fallthrough
CT: control target
= control target key end

     0   :  { %vm128_vm0 = vcmask 64512   ;;  %v1824_v2 = vmov 0   ;;  %s2268_s0 = inlined_call_operand.vmem [shape: s32[16,1], index: 0, kind: input, shape index: {}]   ;;  %s2269_s1 = inlined_call_operand.vmem [shape: f32[16,8], index: 1, kind: input, shape index: {}]   ;;  %s2270_s2 = inlined_call_operand.vmem [shape: f32[328,64], index: 2, kind: input, shape index: {}]   ;;  %s2271_s3 = inlined_call_operand.hbm [shape: f32[16,32], index: 3, kind: output, shape index: {}]  }
   0x1   :  { %v15_v0 = vld [vmem:[%s2268_s0] sm:$0xff]  ;;  %v122_v1 = vld [vmem:[%s2270_s2 + $0x18] sm:$0xff]  ;;  %1791 = vset.pattern.permute.xlu0 %v1824_v2  ;;  %v121_v4 = vld [vmem:[%s2269_s1 + $0x8] sm:$0xff] }
   0x2   :  { %1403 = vmatprep.subr.mxu1 %v122_v1  ;;  %v120_v3 = vld [vmem:[%s2269_s1] sm:$0xff]  ;;  %20 = vperm.xlu0 %1791, %v15_v0   ;;  %v30_v6 = vld [vmem:[%s2270_s2 + $0x8] sm:$0xff] }
   0x3   :  { %v29_v5 = vld [vmem:[%s2270_s2] sm:$0xff]  ;;  %1404 = vmatpush3.msra.mxu1 %v122_v1 }
   0x4   :  { %8 = vsyncpa [#allocation3], 0  ;;  %v16_v7 = vld [vmem:[%s2268_s0 + $0x8] sm:$0xff]  ;;  %1405 = vmatprep.mubr.msk.f32.mxu1 %vm128_vm0, %v120_v3  ;;  %v1598_v8 = vpack.c.bf16 %v30_v6, %v29_v5  ;;  %v217_v10 = vld [vmem:[%s2270_s2 + $0x90] sm:$0xff]  ;;  %v17_v21 = vlaneseq  ;;  %vm36_vm1 = vcmask 130048   ;;  %v1825_v24 = vmov 0.0  }
   0x5   :  { %1406 = vmatmul.mubr.msk.f32.vlgmr.msra.gmra.mrb[0].mxu1 %vm128_vm0, %v121_v4  ;;  %v216_v9 = vld [vmem:[%s2270_s2 + $0x88] sm:$0xff]  ;;  %v395_v13 = vld [vmem:[%s2270_s2 + $0xb0] sm:$0xff]  ;;  %v218_v15 = vld [vmem:[%s2270_s2 + $0x98] sm:$0xff]  ;;  %vm2272_vm4 = vcmask 261120   ;;  %s1828_s15 = smov [#allocation2]  }
   0x6   :  { %1599 = vmatprep.subr.bf16.mxu0 %v1598_v8  ;;  %23 = vperm.xlu0 %1791, %v16_v7   ;;  %v394_v11 = vld [vmem:[%s2270_s2 + $0xa8] sm:$0xff]  ;;  %v1602_v12 = vpack.c.bf16 %v217_v10, %v216_v9  ;;  %v219_v16 = vld [vmem:[%s2270_s2 + $0xa0] sm:$0xff]  ;;  %v213_v19 = vld [vmem:[%s2270_s2 + $0x30] sm:$0xff]  ;;  %v1897_v22 = vand.u32 127, %v17_v21  ;;  %v1970_v2 = vshrl.u32 %v17_v21, 7  ;;  %s1220_s16 = sshll.u32 %s1828_s15, 4  ;;  %s1221_s16 = int_to_ptr.vmem [resolvable:$true] %s1220_s16 }
   0x7   :  { %1601 = vmatpush3.bf16.msra.mxu0 %v1598_v8  ;;  %v1618_v14 = vpack.c.bf16 %v395_v13, %v394_v11  ;;  %v1606_v17 = vpack.c.bf16 %v219_v16, %v218_v15  ;;  %v212_v18 = vld [vmem:[%s2270_s2 + $0x28] sm:$0xff]  ;;  %v396_v26 = vld [vmem:[%s2270_s2 + $0xb8] sm:$0xff]  ;;  %v397_v27 = vld [vmem:[%s2270_s2 + $0xc0] sm:$0xff]  ;;  %s1800_s17 = scalar_lea.vmem %s1221_s16, 256  ;;  %p1805_p1 = scmp.lt.s32.totalorder %s1221_s16, %s1221_s16 }
   0x8   :  { %1603 = vmatprep.subr.bf16.mxu1 %v1602_v12  ;;  %v1610_v20 = vpack.c.bf16 %v213_v19, %v212_v18  ;;  %v1622_v29 = vpack.c.bf16 %v397_v27, %v396_v26  ;;  %v390_v31 = vld [vmem:[%s2270_s2 + $0x48] sm:$0xff]  ;;  %v391_v32 = vld [vmem:[%s2270_s2 + $0x50] sm:$0xff]  ;;  %v1234_v34 = vld [vmem:[%s2270_s2 + $0x20] ss:$0 sm:$0xff]  ;;  %v1973_v3 = vadd.s32 8, %v1970_v2  ;;  %v723_v4 = vadd.s32 16, %v1970_v2  ;;  %p1801_p0 = scmp.ne.s32.totalorder %s1221_s16, %s1800_s17  ;;  %p1806_p2 = scmp.lt.s32.totalorder %s1800_s17, %s1800_s17 }
   0x9   :  { %1619 = vmatprep.subr.bf16.mxu0 %v1618_v14  ;;  %1605 = vmatpush3.bf16.msra.mxu1 %v1602_v12  ;;  %v1626_v33 = vpack.c.bf16 %v391_v32, %v390_v31  ;;  %v214_v40 = vld [vmem:[%s2270_s2 + $0x38] sm:$0xff]  ;;  %v215_v41 = vld [vmem:[%s2270_s2 + $0x40] sm:$0xff]  ;;  %v559_v47 = vld [vmem:[%s2270_s2 + $0xc8] sm:$0xff]  ;;  %v724_v5 = vadd.s32 24, %v1970_v2  ;;  %v726_v6 = vadd.s32 40, %v1970_v2  ;;  %v728_v7 = vadd.s32 56, %v1970_v2 }
   0xa   :  { %1607 = vmatprep.subr.bf16.mxu1 %v1606_v17  ;;  %v392_v43 = vld [vmem:[%s2270_s2 + $0x58] sm:$0xff]  ;;  %v393_v44 = vld [vmem:[%s2270_s2 + $0x60] sm:$0xff]  ;;  %v1614_v45 = vpack.c.bf16 %v215_v41, %v214_v40  ;;  %v560_v48 = vld [vmem:[%s2270_s2 + $0xd0] sm:$0xff]  ;;  %v753_v8 = vshrl.u32 %v1897_v22, 3  ;;  %v738_v9 = vshrl.u32 %v1973_v3, 4  ;;  %v725_v10 = vadd.s32 32, %v1970_v2  ;;  %p1807_p3 = por %p1806_p2, %p1805_p1 }
   0xb   :  { %v1630_v46 = vpack.c.bf16 %v393_v44, %v392_v43  ;;  %v1634_v49 = vpack.c.bf16 %v560_v48, %v559_v47  ;;  %v1231_v50 = vld [vmem:[%s2270_s2 + $0x10] ss:$0 sm:$0xff]  ;;  %v561_v55 = vld [vmem:[%s2270_s2 + $0xd8] sm:$0xff]  ;;  %v562_v56 = vld [vmem:[%s2270_s2 + $0xe0] sm:$0xff]  ;;  %v737_v11 = vshrl.u32 %v1970_v2, 4  ;;  %v739_v12 = vshrl.u32 %v723_v4, 4 }
   0xc   :  { %v1638_v59 = vpack.c.bf16 %v562_v56, %v561_v55  ;;  %v555_v60 = vld [vmem:[%s2270_s2 + $0x68] sm:$0xff]  ;;  %v556_v61 = vld [vmem:[%s2270_s2 + $0x70] sm:$0xff]  ;;  %v557_v63 = vld [vmem:[%s2270_s2 + $0x78] sm:$0xff]  ;;  %v740_v13 = vshrl.u32 %v724_v5, 4  ;;  %v729_v15 = vadd.s32 64, %v1970_v2  ;;  %v730_v16 = vadd.s32 72, %v1970_v2  ;;  %p1808_p4 = pnand %p1807_p3, %p1801_p0 }
   0xd   :  { %1609 = vmatpush3.bf16.msra.mxu1 %v1606_v17  ;;  %v1642_v62 = vpack.c.bf16 %v556_v61, %v555_v60  ;;  %v558_v0 = vld [vmem:[%s2270_s2 + $0x80] sm:$0xff]  ;;  %v731_v17 = vadd.s32 80, %v1970_v2  ;;  %v732_v18 = vadd.s32 88, %v1970_v2  ;;  %v742_v19 = vshrl.u32 %v726_v6, 4  ;;  %v1121_v31 = vld [vmem:[%s2270_s2 + $0x110] sm:$0xff]  ;;  %v1124_v48 = vld [vmem:[%s2270_s2 + $0x128] sm:$0xff] }
   0xe   :  { %1611 = vmatprep.subr.bf16.mxu1 %v1610_v20  ;;  %v1646_v1 = vpack.c.bf16 %v558_v0, %v557_v63  ;;  %v733_v21 = vadd.s32 96, %v1970_v2  ;;  %vm1990_vm5 = vcmp.eq.s32.totalorder %v738_v9, %v753_v8  ;;  %v741_v26 = vshrl.u32 %v725_v10, 4  ;;  %v1123_v47 = vld [vmem:[%s2270_s2 + $0x120] sm:$0xff] }
   0xf   :  { %v735_v27 = vadd.s32 112, %v1970_v2  ;;  %vm1996_vm6 = vcmp.eq.s32.totalorder %v737_v11, %v753_v8  ;;  %vm2000_vm7 = vcmp.eq.s32.totalorder %v739_v12, %v753_v8  ;;  %vm2004_vm8 = vcmp.eq.s32.totalorder %v740_v13, %v753_v8 }
  0x10   :  { %vm2013_vm10 = vcmp.eq.s32.totalorder %v742_v19, %v753_v8  ;;  %v2020_v41 = vsel %vm2004_vm8, 1.0, %v1825_v24  ;;  %vm2022_vm11 = vcmp.eq.s32.totalorder %v741_v26, %v753_v8  ;;  %v2305_v61 = vmov 0 }
  0x11   :  { %v751_v43 = vshrl.u32 %v735_v27, 4  ;;  %v2069_v55 = vsel %vm2022_vm11, 1.0, %v1825_v24  ;;  %v775_v56 = vsel %vm2013_vm10, 1.0, %v1825_v24 }
  0x81   :  { %v21_v23 = vpop.permute.xlu0 %20 }
  0x82   :  { %vm25_vm2 = vcmp.eq.s32.totalorder %v1897_v22, %v21_v23  ;;  %v734_v23 = vadd.s32 104, %v1970_v2 }
  0x83   :  { %v27_v25 = vsel %vm25_vm2, 1.0, %v1825_v24 }
  0x84   :  { %1400 = vmatprep.mubr.msk.f32.mxu0 %vm36_vm1, %v27_v25  ;;  %v750_v40 = vshrl.u32 %v734_v23, 4  ;;  %v1119_v25 = vld [vmem:[%s2270_s2 + $0x100] sm:$0xff] }
  0x85   :  { %v24_v28 = vpop.permute.xlu0 %23 }
  0x86   :  { %vm26_vm3 = vcmp.eq.s32.totalorder %v1897_v22, %v24_v28  ;;  %v736_v28 = vadd.s32 120, %v1970_v2 }
  0x87   :  { %v28_v30 = vsel %vm26_vm3, 1.0, %v1825_v24  ;;  %vm2078_vm3 = vcmp.eq.s32.totalorder %v750_v40, %v753_v8 }
  0x88   :  { %1401 = vmatmul.mubr.msk.f32.vlgmr.msra.gmra.mrb[0].mxu0 %vm36_vm1, %v28_v30  ;;  %v752_v44 = vshrl.u32 %v736_v28, 4  ;;  %v783_v12 = vsel %vm2078_vm3, 1.0, %v1825_v24 }
  0x89   :  { %1621 = vmatpush3.bf16.msra.mxu0 %v1618_v14  ;;  %v727_v14 = vadd.s32 48, %v1970_v2 }
  0x8a   :  { %1623 = vmatprep.subr.bf16.mxu0 %v1622_v29  ;;  %vm2094_vm9 = vcmp.eq.s32.totalorder %v752_v44, %v753_v8 }
  0x8b   :  { %v743_v32 = vshrl.u32 %v727_v14, 4 }
  0x8d   :  { %1625 = vmatpush3.bf16.msra.mxu0 %v1622_v29  ;;  %vm2036_vm12 = vcmp.eq.s32.totalorder %v743_v32, %v753_v8  ;;  %v1120_v29 = vld [vmem:[%s2270_s2 + $0x108] sm:$0xff] }
  0x8e   :  { %1627 = vmatprep.subr.bf16.mxu0 %v1626_v33  ;;  %v1762_v30 = vpack.c.bf16 %v1120_v29, %v1119_v25 }
  0xd8   :  { %v1407_v35 = vpop.f32.mrb[0].mxu1 }
  0xd9   :  { %v207_v36 = vadd.f32 %v1407_v35, %v1234_v34  ;;  %v201_v37 = vpop.f32.mrb[1].mxu1  ;;  %v747_v35 = vshrl.u32 %v731_v17, 4 }
  0xda   :  { %v202_v38 = vadd.f32 %v1234_v34, %v201_v37  ;;  %v746_v34 = vshrl.u32 %v730_v16, 4  ;;  %v2011_v37 = vsel %vm1990_vm5, 1.0, %v1825_v24  ;;  %v785_v16 = vsel %vm2094_vm9, 1.0, %v1825_v24 }
  0xdb   :  { %v211_v39 = vmax.f32 %v207_v36, 0.0  ;;  %v748_v36 = vshrl.u32 %v732_v18, 4  ;;  %vm2052_vm0 = vcmp.eq.s32.totalorder %v747_v35, %v753_v8 }
  0xdc   :  { %v210_v42 = vmax.f32 %v202_v38, 0.0  ;;  %vm2048_vm15 = vcmp.eq.s32.totalorder %v746_v34, %v753_v8  ;;  %v780_v5 = vsel %vm2052_vm0, 1.0, %v1825_v24  ;;  %v1122_v38 = vld [vmem:[%s2270_s2 + $0x118] sm:$0xff] }
  0xdd   :  { %vm2056_vm1 = vcmp.eq.s32.totalorder %v748_v36, %v753_v8  ;;  %v779_v4 = vsel %vm2048_vm15, 1.0, %v1825_v24 }
  0xde   :  { %1416 = vmatprep.mubr.msk.f32.mxu1 %vm2272_vm4, %v210_v42  ;;  %1438 = vmatprep.mubr.msk.f32.mxu0 %vm2272_vm4, %v210_v42  ;;  %v781_v6 = vsel %vm2056_vm1, 1.0, %v1825_v24 }
  0xdf   :  { %1417 = vmatmul.mubr.msk.f32.vlgmr.msra.gmra.mrb[2].mxu1 %vm2272_vm4, %v211_v39  ;;  %1439 = vmatmul.mubr.msk.f32.vlgmr.msra.gmra.mrb[2].mxu0 %vm2272_vm4, %v211_v39 }
  0xe0   :  { %1613 = vmatpush3.bf16.msra.mxu1 %v1610_v20  ;;  %1629 = vmatpush3.bf16.msra.mxu0 %v1626_v33  ;;  %v744_v20 = vshrl.u32 %v728_v7, 4  ;;  %v745_v33 = vshrl.u32 %v729_v15, 4 }
  0xe1   :  { %1615 = vmatprep.subr.bf16.mxu1 %v1614_v45  ;;  %1631 = vmatprep.subr.bf16.mxu0 %v1630_v46 }
  0xe2   :  { %vm2040_vm13 = vcmp.eq.s32.totalorder %v744_v20, %v753_v8  ;;  %vm2044_vm14 = vcmp.eq.s32.totalorder %v745_v33, %v753_v8 }
  0xe3   :  { %v777_v60 = vsel %vm2040_vm13, 1.0, %v1825_v24 }
  0xe4   :  { %1617 = vmatpush3.bf16.msra.mxu1 %v1614_v45  ;;  %1633 = vmatpush3.bf16.msra.mxu0 %v1630_v46  ;;  %v2029_v45 = vsel %vm1996_vm6, 1.0, %v1825_v24  ;;  %v2034_v46 = vsel %vm2000_vm7, 1.0, %v1825_v24 }
  0xe5   :  { %1635 = vmatprep.subr.bf16.mxu1 %v1634_v49 }
 0x15b   :  { %v1402_v51 = vpop.f32.mrb[0].mxu0 }
 0x15c   :  { %v115_v52 = vadd.f32 %v1402_v51, %v1231_v50  ;;  %v109_v53 = vpop.f32.mrb[1].mxu0  ;;  %v1126_v51 = vld [vmem:[%s2270_s2 + $0x138] sm:$0xff] }
 0x15d   :  { %v110_v54 = vadd.f32 %v1231_v50, %v109_v53  ;;  %v1241_v53 = vld [vmem:[%s2270_s2 + $0xe8] ss:$0 sm:$0xff]  ;;  %v1125_v50 = vld [vmem:[%s2270_s2 + $0x130] sm:$0xff] }
 0x15e   :  { %v119_v58 = vmax.f32 %v115_v52, 0.0  ;;  %v1774_v52 = vpack.c.bf16 %v1126_v51, %v1125_v50 }
 0x15f   :  { %v118_v57 = vmax.f32 %v110_v54, 0.0  ;;  %v1246_v54 = vld [vmem:[%s2270_s2 + $0xf0] ss:$0 sm:$0xff] }
 0x161   :  { %1427 = vmatprep.mubr.msk.f32.mxu1 %vm2272_vm4, %v118_v57  ;;  %1449 = vmatprep.mubr.msk.f32.mxu0 %vm2272_vm4, %v118_v57 }
 0x162   :  { %1428 = vmatmul.mubr.msk.f32.vlgmr.msra.gmra.mrb[2].mxu1 %vm2272_vm4, %v119_v58  ;;  %1450 = vmatmul.mubr.msk.f32.vlgmr.msra.gmra.mrb[2].mxu0 %vm2272_vm4, %v119_v58 }
 0x163   :  { %1637 = vmatpush3.bf16.msra.mxu1 %v1634_v49  ;;  %1460 = vmatprep.mubr.msk.f32.mxu1 %vm2272_vm4, %v210_v42  ;;  %v1766_v42 = vpack.c.bf16 %v1122_v38, %v1121_v31  ;;  %v1770_v49 = vpack.c.bf16 %v1124_v48, %v1123_v47 }
 0x164   :  { %1639 = vmatprep.subr.bf16.mxu1 %v1638_v59 }
 0x167   :  { %1641 = vmatpush3.bf16.msra.mxu1 %v1638_v59  ;;  %v2085_v59 = vsel %vm2036_vm12, 1.0, %v1825_v24 }
 0x168   :  { %1643 = vmatprep.subr.bf16.mxu1 %v1642_v62 }
 0x16a   :  { %1461 = vmatmul.mubr.msk.f32.vlgmr.msra.gmra.mrb[4].mxu1 %vm2272_vm4, %v211_v39  ;;  %v749_v39 = vshrl.u32 %v733_v21, 4 }
 0x16b   :  { %1645 = vmatpush3.bf16.msra.mxu1 %v1642_v62  ;;  %1471 = vmatprep.mubr.msk.f32.mxu1 %vm2272_vm4, %v118_v57  ;;  %v2301_v57 = vmov 0  ;;  %v2307_v62 = vmov 0 }
 0x16c   :  { %1647 = vmatprep.subr.bf16.mxu1 %v1646_v1  ;;  %vm2074_vm2 = vcmp.eq.s32.totalorder %v749_v39, %v753_v8  ;;  %v2308_v62 = vsel %vm2094_vm9, 4294967295, %v2307_v62 }
 0x16d   :  { %v2302_v57 = vsel %vm2074_vm2, 4294967295, %v2301_v57  ;;  %v782_v11 = vsel %vm2074_vm2, 1.0, %v1825_v24  ;;  %vm2309_vm2 = vcmask 523264  }
 0x16f   :  { %1649 = vmatpush3.bf16.msra.mxu1 %v1646_v1  ;;  %v778_v1 = vsel %vm2044_vm14, 1.0, %v1825_v24 }
 0x172   :  { %1472 = vmatmul.mubr.msk.f32.vlgmr.msra.gmra.mrb[4].mxu1 %vm2272_vm4, %v119_v58  ;;  %v2303_v58 = vmov 0  ;;  %vm2090_vm4 = vcmp.eq.s32.totalorder %v751_v43, %v753_v8 }
 0x173   :  { %v2304_v58 = vsel %vm2078_vm3, 4294967295, %v2303_v58  ;;  %v2306_v61 = vsel %vm2090_vm4, 4294967295, %v2305_v61  ;;  %v784_v15 = vsel %vm2090_vm4, 1.0, %v1825_v24  ;;  %vm2310_vm4 = vmmov %vm2309_vm2 }
 0x174   :  { %vm2133_vm3 = vmpackc.low %vm2310_vm4, %vm2310_vm4 }
 0x175   :  { %vm2313_vm4 = vmmov %vm2309_vm2 }
 0x235   :  { %v1429_v63 = vpop.f32.mrb[2].mxu1  ;;  %v1451_v0 = vpop.f32.mrb[2].mxu0 }
 0x236   :  { %v2110_v7 = vadd.f32 %v1429_v63, %v1241_v53  ;;  %v554_v8 = vadd.f32 %v1451_v0, %v1246_v54  ;;  %v374_v9 = vpop.f32.mrb[3].mxu1  ;;  %v539_v10 = vpop.f32.mrb[3].mxu0 }
 0x237   :  { %v388_v13 = vadd.f32 %v1241_v53, %v374_v9  ;;  %v553_v14 = vadd.f32 %v1246_v54, %v539_v10 }
 0x238   :  { %v787_v17 = vmul.f32 %v2011_v37, %v554_v8  ;;  %v789_v18 = vmul.f32 %v2020_v41, %v554_v8  ;;  %v791_v19 = vmul.f32 %v775_v56, %v554_v8  ;;  %v793_v20 = vmul.f32 %v777_v60, %v554_v8 }
 0x239   :  { %1506 = vmatprep.mubr.msk.f32.mxu0 %vm2309_vm2, %v388_v13  ;;  %v786_v21 = vmul.f32 %v2029_v45, %v553_v14  ;;  %v788_v23 = vmul.f32 %v2034_v46, %v553_v14  ;;  %v790_v26 = vmul.f32 %v2069_v55, %v553_v14  ;;  %v792_v27 = vmul.f32 %v2085_v59, %v553_v14  ;;  %v1251_v13 = vld [vmem:[%s2270_s2 + $0xf8] ss:$0 sm:$0xff] }
 0x23a   :  { %v794_v28 = vmul.f32 %v778_v1, %v553_v14  ;;  %v795_v32 = vmul.f32 %v779_v4, %v554_v8  ;;  %v796_v33 = vmul.f32 %v780_v5, %v553_v14  ;;  %v797_v34 = vmul.f32 %v781_v6, %v554_v8 }
 0x23b   :  { %v1650_v35 = vpack.c.bf16 %v787_v17, %v786_v21  ;;  %v1656_v36 = vpack.c.bf16 %v789_v18, %v788_v23  ;;  %v1662_v39 = vpack.c.bf16 %v791_v19, %v790_v26  ;;  %v1668_v40 = vpack.c.bf16 %v793_v20, %v792_v27 }
 0x23c   :  { %v1674_v43 = vpack.c.bf16 %v795_v32, %v794_v28  ;;  %v1680_v44 = vpack.c.bf16 %v797_v34, %v796_v33  ;;  %v798_v53 = vmul.f32 %v782_v11, %v553_v14  ;;  %v799_v54 = vmul.f32 %v783_v12, %v554_v8 }
 0x23d   :  { %1652 = vmatprep.subr.msk.bf16.mxu0 %vm2133_vm3, %v1650_v35  ;;  %v800_v63 = vmul.f32 %v784_v15, %v553_v14  ;;  %v801_v0 = vmul.f32 %v785_v16, %v554_v8 }
 0x23e   :  { %1655 = vmatpush3.bf16.xpose.msk.msra.mxu0 %vm2133_vm3, %v1650_v35  ;;  %v1686_v9 = vpack.c.bf16 %v799_v54, %v798_v53 }
 0x23f   :  { %1658 = vmatprep.subr.msk.bf16.mxu0 %vm2133_vm3, %v1656_v36  ;;  %v1692_v10 = vpack.c.bf16 %v801_v0, %v800_v63 }
 0x245   :  { %v1473_v17 = vpop.f32.mrb[4].mxu1 }
 0x246   :  { %v719_v18 = vadd.f32 %v1473_v17, %v1251_v13  ;;  %v704_v19 = vpop.f32.mrb[5].mxu1  ;;  %1661 = vmatpush3.bf16.xpose.msk.msra.mxu0 %vm2133_vm3, %v1656_v36 }
 0x247   :  { %v718_v14 = vadd.f32 %v1251_v13, %v704_v19  ;;  %1664 = vmatprep.subr.msk.bf16.mxu0 %vm2133_vm3, %v1662_v39 }
 0x248   :  { %v803_v8 = vmul.f32 %v2011_v37, %v719_v18  ;;  %v805_v20 = vmul.f32 %v2020_v41, %v719_v18  ;;  %v807_v21 = vmul.f32 %v775_v56, %v719_v18  ;;  %v809_v23 = vmul.f32 %v777_v60, %v719_v18 }
 0x249   :  { %v802_v26 = vmul.f32 %v2029_v45, %v718_v14  ;;  %v804_v27 = vmul.f32 %v2034_v46, %v718_v14  ;;  %v806_v28 = vmul.f32 %v2069_v55, %v718_v14  ;;  %v808_v32 = vmul.f32 %v2085_v59, %v718_v14 }
 0x24a   :  { %v810_v33 = vmul.f32 %v778_v1, %v718_v14  ;;  %v811_v34 = vmul.f32 %v779_v4, %v719_v18  ;;  %v812_v35 = vmul.f32 %v780_v5, %v718_v14  ;;  %v813_v36 = vmul.f32 %v781_v6, %v719_v18 }
 0x24b   :  { %v1698_v53 = vpack.c.bf16 %v803_v8, %v802_v26  ;;  %v1702_v54 = vpack.c.bf16 %v805_v20, %v804_v27  ;;  %v1706_v63 = vpack.c.bf16 %v807_v21, %v806_v28  ;;  %v1710_v37 = vpack.c.bf16 %v809_v23, %v808_v32 }
 0x24c   :  { %v1714_v0 = vpack.c.bf16 %v811_v34, %v810_v33  ;;  %v1718_v41 = vpack.c.bf16 %v813_v36, %v812_v35  ;;  %v814_v56 = vmul.f32 %v782_v11, %v718_v14  ;;  %v815_v60 = vmul.f32 %v783_v12, %v719_v18 }
 0x24d   :  { %1699 = vmatprep.subr.bf16.mxu1 %v1698_v53  ;;  %v816_v45 = vmul.f32 %v784_v15, %v718_v14  ;;  %v817_v13 = vmul.f32 %v785_v16, %v719_v18  ;;  %v820_v59 = vand.u32 1, %v1897_v22  ;;  %v818_v1 = vand.u32 1, %v1970_v2  ;;  %v1286_v14 = vld [vmem:[%s2270_s2 + $0x140] ss:$0 sm:$0xff] }
 0x24e   :  { %1701 = vmatpush3.bf16.msra.mxu1 %v1698_v53  ;;  %1667 = vmatpush3.bf16.xpose.msk.msra.mxu0 %vm2133_vm3, %v1662_v39  ;;  %v1722_v46 = vpack.c.bf16 %v815_v60, %v814_v56  ;;  %v819_v4 = vand.u32 1, %v1973_v3  ;;  %v1826_v5 = vmov -1e+30   ;;  %v1827_v22 = vmov 1.0|1.0  }
 0x24f   :  { %1703 = vmatprep.subr.bf16.mxu1 %v1702_v54  ;;  %1670 = vmatprep.subr.msk.bf16.mxu0 %vm2133_vm3, %v1668_v40  ;;  %v1726_v55 = vpack.c.bf16 %v817_v13, %v816_v45  ;;  %vm821_vm2 = vcmp.eq.s32.totalorder %v818_v1, %v820_v59 }
 0x250   :  { %v823_v6 = vsel %vm821_vm2, 0.0, %v1826_v5  ;;  %vm822_vm9 = vcmp.eq.s32.totalorder %v819_v4, %v820_v59 }
 0x251   :  { %v824_v16 = vsel %vm822_vm9, 0.0, %v1826_v5  ;;  %vm1734_vm9 = vmpackc.low %vm2004_vm8, %vm2000_vm7  ;;  %vm2314_vm8 = vnez %v2302_v57 }
 0x252   :  { %1705 = vmatpush3.bf16.msra.mxu1 %v1702_v54  ;;  %vm1742_vm7 = vmpackc.low %vm2040_vm13, %vm2036_vm12  ;;  %vm2316_vm12 = vnez %v2306_v61  ;;  %vm2317_vm13 = vnez %v2308_v62 }
 0x253   :  { %1707 = vmatprep.subr.bf16.mxu1 %v1706_v63 }
 0x256   :  { %1709 = vmatpush3.bf16.msra.mxu1 %v1706_v63  ;;  %1673 = vmatpush3.bf16.xpose.msk.msra.mxu0 %vm2133_vm3, %v1668_v40 }
 0x257   :  { %1711 = vmatprep.subr.bf16.mxu1 %v1710_v37  ;;  %1676 = vmatprep.subr.msk.bf16.mxu0 %vm2133_vm3, %v1674_v43 }
 0x25a   :  { %1713 = vmatpush3.bf16.msra.mxu1 %v1710_v37 }
 0x25b   :  { %1715 = vmatprep.subr.bf16.mxu1 %v1714_v0 }
 0x25e   :  { %1717 = vmatpush3.bf16.msra.mxu1 %v1714_v0  ;;  %1679 = vmatpush3.bf16.xpose.msk.msra.mxu0 %vm2133_vm3, %v1674_v43 }
 0x25f   :  { %1719 = vmatprep.subr.bf16.mxu1 %v1718_v41  ;;  %1682 = vmatprep.subr.msk.bf16.mxu0 %vm2133_vm3, %v1680_v44 }
 0x262   :  { %1721 = vmatpush3.bf16.msra.mxu1 %v1718_v41 }
 0x263   :  { %1723 = vmatprep.subr.bf16.mxu1 %v1722_v46 }
 0x266   :  { %1725 = vmatpush3.bf16.msra.mxu1 %v1722_v46  ;;  %1685 = vmatpush3.bf16.xpose.msk.msra.mxu0 %vm2133_vm3, %v1680_v44 }
 0x267   :  { %1727 = vmatprep.subr.bf16.mxu1 %v1726_v55  ;;  %1688 = vmatprep.subr.msk.bf16.mxu0 %vm2133_vm3, %v1686_v9 }
 0x26a   :  { %1729 = vmatpush3.bf16.msra.mxu1 %v1726_v55 }
 0x26e   :  { %1691 = vmatpush3.bf16.xpose.msk.msra.mxu0 %vm2133_vm3, %v1686_v9 }
 0x26f   :  { %1694 = vmatprep.subr.msk.bf16.mxu0 %vm2133_vm3, %v1692_v10 }
 0x276   :  { %1697 = vmatpush3.bf16.xpose.msk.msra.mxu0 %vm2133_vm3, %v1692_v10  ;;  %vm1730_vm3 = vmpackc.low %vm1990_vm5, %vm1996_vm6 }
 0x277   :  { %1731 = vmatprep.subr.msk.bf16.mxu1 %vm1730_vm3, %v1827_v22  ;;  %vm1746_vm5 = vmpackc.low %vm2048_vm15, %vm2044_vm14  ;;  %1763 = vmatprep.subr.bf16.mxu0 %v1762_v30  ;;  %vm2318_vm15 = vcmask 523264  }
 0x278   :  { %vm1750_vm6 = vmpackc.low %vm2056_vm1, %vm2052_vm0  ;;  %vm2320_vm1 = vcmask 261120  }
 0x279   :  { %vm1758_vm14 = vmpackc.low %vm2317_vm13, %vm2316_vm12 }
 0x27a   :  { %vm2319_vm0 = vmmov %vm2318_vm15 }
 0x27b   :  { %vm2321_vm2 = vmmov %vm2320_vm1 }
 0x27d   :  { %1507 = vmatmul.mubr.msk.f32.vlgmr.msra.gmra.mrb[4].mxu0 %vm2313_vm4, %v2110_v7  ;;  %vm1738_vm4 = vmpackc.low %vm2013_vm10, %vm2022_vm11  ;;  %vm2315_vm10 = vnez %v2304_v58 }
 0x27e   :  { %vm1754_vm11 = vmpackc.low %vm2315_vm10, %vm2314_vm8  ;;  %1765 = vmatpush3.bf16.msra.mxu0 %v1762_v30 }
 0x27f   :  { %1767 = vmatprep.subr.bf16.mxu0 %v1766_v42 }
 0x282   :  { %1769 = vmatpush3.bf16.msra.mxu0 %v1766_v42 }
 0x283   :  { %1771 = vmatprep.subr.bf16.mxu0 %v1770_v49 }
 0x286   :  { %1773 = vmatpush3.bf16.msra.mxu0 %v1770_v49 }
 0x287   :  { %1775 = vmatprep.subr.bf16.mxu0 %v1774_v52 }
 0x28a   :  { %1777 = vmatpush3.bf16.msra.mxu0 %v1774_v52 }
 0x350   :  { %v1508_v11 = vpop.f32.mrb[4].mxu0 }
 0x351   :  { %v946_v12 = vpop.f32.mrb[5].mxu0  ;;  %v952_v24 = vadd.f32 %v1508_v11, %v824_v16 }
 0x352   :  { %v947_v15 = vadd.f32 %v946_v12, %v823_v6 }
 0x354   :  { %955 = vmax.xlane.f32.xlu1 %v947_v15 }
 0x358   :  { %957 = vmax.xlane.f32.xlu1 %v952_v24 }
 0x3e1   :  { %v956_v2 = vpop.xlane.xlu1 %955 }
 0x3e2   :  { %v959_v3 = vsub.f32 %v947_v15, %v956_v2 }
 0x3e4   :  { %v961_v7 = vmul.f32 1.442695, %v959_v3 }
 0x3e5   :  { %v958_v39 = vpop.xlane.xlu1 %957 }
 0x3e6   :  { %1792 = vpow2.f32 %v961_v7  ;;  %v960_v40 = vsub.f32 %v952_v24, %v958_v39 }
 0x3e8   :  { %v963_v43 = vmul.f32 1.442695, %v960_v40 }
 0x3ea   :  { %1794 = vpow2.f32 %v963_v43 }
 0x3f0   :  { %v1793_v44 = vpop.eup %1792 }
 0x3f1   :  { %1541 = vmatprep.mubr.f32.mxu1 %v1793_v44 }
 0x3f4   :  { %v1795_v9 = vpop.eup %1794 }
 0x3f5   :  { %1542 = vmatmul.mubr.f32.vlgmr.msra.gmra.mrb[6].mxu1 %v1795_v9 }
 0x3f6   :  { %1733 = vmatpush3.bf16.msk.msra.mxu1 %vm1730_vm3, %v1827_v22  ;;  %1576 = vmatprep.mubr.f32.mxu1 %v1793_v44 }
 0x3f7   :  { %1735 = vmatprep.subr.msk.bf16.mxu1 %vm1734_vm9, %v1827_v22 }
 0x3fa   :  { %1737 = vmatpush3.bf16.msk.msra.mxu1 %vm1734_vm9, %v1827_v22 }
 0x3fb   :  { %1739 = vmatprep.subr.msk.bf16.mxu1 %vm1738_vm4, %v1827_v22 }
 0x3fe   :  { %1741 = vmatpush3.bf16.msk.msra.mxu1 %vm1738_vm4, %v1827_v22 }
 0x3ff   :  { %1743 = vmatprep.subr.msk.bf16.mxu1 %vm1742_vm7, %v1827_v22 }
 0x402   :  { %1745 = vmatpush3.bf16.msk.msra.mxu1 %vm1742_vm7, %v1827_v22 }
 0x403   :  { %1747 = vmatprep.subr.msk.bf16.mxu1 %vm1746_vm5, %v1827_v22 }
 0x406   :  { %1749 = vmatpush3.bf16.msk.msra.mxu1 %vm1746_vm5, %v1827_v22 }
 0x407   :  { %1751 = vmatprep.subr.msk.bf16.mxu1 %vm1750_vm6, %v1827_v22 }
 0x40a   :  { %1753 = vmatpush3.bf16.msk.msra.mxu1 %vm1750_vm6, %v1827_v22 }
 0x40b   :  { %1755 = vmatprep.subr.msk.bf16.mxu1 %vm1754_vm11, %v1827_v22 }
 0x40e   :  { %1757 = vmatpush3.bf16.msk.msra.mxu1 %vm1754_vm11, %v1827_v22 }
 0x40f   :  { %1759 = vmatprep.subr.msk.bf16.mxu1 %vm1758_vm14, %v1827_v22 }
 0x412   :  { %1761 = vmatpush3.bf16.msk.msra.mxu1 %vm1758_vm14, %v1827_v22 }
 0x415   :  { %1577 = vmatmul.mubr.f32.vlgmr.msra.gmra.mrb[8].mxu1 %v1795_v9 }
 0x4c8   :  { %v1543_v57 = vpop.f32.mrb[6].mxu1 }
 0x4c9   :  { %v1031_v58 = vpop.f32.mrb[7].mxu1 }
 0x4e8   :  { %v1578_v61 = vpop.f32.mrb[8].mxu1 }
 0x4e9   :  { %1796 = vrcp.f32 %v1578_v61  ;;  %v1106_v62 = vpop.f32.mrb[9].mxu1 }
 0x4ea   :  { %1798 = vrcp.f32 %v1106_v62 }
 0x4f3   :  { %v1797_v10 = vpop.eup %1796 }
 0x4f4   :  { %v1799_v17 = vpop.eup %1798  ;;  %v1118_v18 = vmul.f32 %v1797_v10, %v1543_v57 }
 0x4f5   :  { %v1117_v19 = vmul.f32 %v1799_v17, %v1031_v58 }
 0x4f7   :  { %1595 = vmatprep.mubr.msk.f32.mxu0 %vm2318_vm15, %v1117_v19 }
 0x4f8   :  { %1596 = vmatmul.mubr.msk.f32.vlgmr.msra.gmra.mrb[6].mxu0 %vm2319_vm0, %v1118_v18 }
 0x5cb   :  { %v1597_v8 = vpop.f32.mrb[6].mxu0 }
 0x5cc   :  { %v1210_v20 = vadd.f32 %v1597_v8, %v1286_v14  ;;  %v1204_v21 = vpop.f32.mrb[7].mxu0 }
 0x5cd   :  { %v1205_v23 = vadd.f32 %v1286_v14, %v1204_v21 }
 0x5ce   :  { %1214 = vst.msk [vmem:[#allocation2 + $0x8] sm:$0xff] %vm2320_vm1, %v1210_v20 }
 0x5cf   :  { %1213 = vst.msk [vmem:[#allocation2] sm:$0xff] %vm2321_vm2, %v1205_v23 }
 0x5d0   :  { %1811 = shalt.err (!%p1808_p4)
}
 0x5d1   :  { %s1812_s19 = scalar_lea.hbm %s2271_s3, 256 }
 0x5d2   :  { %p1813_p5 = scmp.ne.s32.totalorder %s2271_s3, %s1812_s19  ;;  %p1816_p6 = scmp.lt.u32.totalorder %s1812_s19, %s2271_s3 }
 0x5d4   :  { %p1818_p7 = pnand %p1816_p6, %p1813_p5 }
 0x5d6   :  { %1821 = shalt.err (!%p1818_p7)
}
 0x5d7   :  { %s1829_s24 = smov 128   ;;  %s1830_s25 = smov 8  }
 0x5d8   :  { %1226 = dma.vmem_to_hbm [thread:$0]  %s1221_s16, 256, %s2271_s3, [#allocation3], %s1829_s24, %s1829_s24, %s1830_s25  }
 0x5d9   :  { %1822 = dma.done.wait [#allocation3], 256  }
 0x5da   :  { %1823 = vsyncadd [#allocation3], 4294967040 }
 0x5db   :  { %1230 = vsyncpa [#allocation3], 1 }

</bundles_post_ra>
